<compile_context>
chip_gen: v5e
topology: v5e:2x2
jax: 0.10.0
libtpu: 0.0.40
codegen_flags: <defaults>
</compile_context>

<pallas_src>
import functools

import jax
import jax.numpy as jnp
from jax import lax
from jax.experimental import pallas as pl
from jax.experimental.pallas import tpu as pltpu


# ---------------------------------------------------------------------------
# Generation-aware VMEM sizing.
# ---------------------------------------------------------------------------
@functools.lru_cache(maxsize=None)
def _vmem_budget_and_limit():
    """(working-set budget, vmem_limit_bytes); conservative if query fails."""
    mib = 1024 * 1024
    try:
        cap = int(pltpu.get_tpu_info().vmem_capacity_bytes)
    except Exception:
        cap = 0
    if cap >= 100 * mib:            # 128-MiB parts: v5e / v6e
        return 44 * mib, 64 * mib
    return 22 * mib, 32 * mib       # 64-MiB parts (v7x) or unknown


# ---------------------------------------------------------------------------
# Tile-size heuristics.
# ---------------------------------------------------------------------------
def _pick_tn(cout):
    # Output-channel tile: full width when small, else a 256-wide lane tile.
    if cout > 256 and cout % 256 == 0:
        return 256
    return cout


def _conv_vmem_bytes(nbt, tho, wo, kdim, tn, pooled):
    m = nbt * tho * wo
    in_blk = 2 * nbt * tho * wo * kdim * 2      # body bf16, double-buffered
    halo = 2 * nbt * wo * kdim * 2              # 1-row halo, double-buffered
    w_blk = 2 * 2 * kdim * tn * 2               # (2, kdim, tn) bf16 weights
    out_blk = 2 * (nbt * tn * 4 if pooled else m * tn * 2)
    tmp = m * kdim * 2 + 2 * m * tn * 4         # dh=1 concat LHS + f32 acc/epilogue
    return in_blk + halo + w_blk + out_blk + tmp


def _pick_tho(ho, wo, kdim, tn, budget):
    # TODO(synk): support non-divisor tho via pl.cdiv + masked last tile so an
    # awkward spatial size cannot collapse to tho=1.
    fits = [t for t in range(ho, 0, -1)
            if ho % t == 0 and _conv_vmem_bytes(1, t, wo, kdim, tn, False) <= budget]
    if not fits:
        return 1
    aligned = [t for t in fits if (t * wo) % 8 == 0]
    return aligned[0] if aligned else fits[0]


def _pick_pool_tiles(n, ho, wo, kdim, tn, budget):
    """Batch-block the pooled (last) layer so the MXU M dim is nbt*ho*wo."""
    m_cap = 1024
    for nbt in range(n, 0, -1):
        if n % nbt:
            continue
        if nbt > 1 and nbt * ho * wo > m_cap:
            continue
        if _conv_vmem_bytes(nbt, ho, wo, kdim, tn, True) <= budget:
            return nbt, ho
    # Fall back: no batch blocking, tile H (reduction axis).
    for tho in range(ho, 0, -1):
        if ho % tho == 0 and _conv_vmem_bytes(1, tho, wo, kdim, tn, True) <= budget:
            return 1, tho
    return 1, 1


# ---------------------------------------------------------------------------
# Conv(k=4, s=2, p=1) + LeakyReLU kernels (optionally fused with avg-pool).
# ---------------------------------------------------------------------------
def _conv_compute(xs_ref, halo_ref, w_ref, b_ref, *, slope):
    """LeakyReLU(bias + sum_dh LHS_dh @ W_dh) for one (nbt*tho*wo, tn) tile."""
    nbt, tho, wo, kdim = xs_ref.shape
    m = nbt * tho * wo
    # dh = 0: the input block itself -- layout-preserving reshape, no copy.
    lhs0 = xs_ref[...].reshape(m, kdim)
    acc = jnp.dot(lhs0, w_ref[0], preferred_element_type=jnp.float32)
    # dh = 1: block rows 1..tho-1 plus the 1-row halo (same HBM array, second
    # BlockSpec).  Single tile-sized bf16 concat; independent of the dh=0 dot.
    if tho > 1:
        lhs1 = jnp.concatenate([xs_ref[:, 1:], halo_ref[...]], axis=1)
    else:
        lhs1 = halo_ref[...]
    acc = acc + jnp.dot(lhs1.reshape(m, kdim), w_ref[1],
                        preferred_element_type=jnp.float32)
    y = acc + b_ref[...]                                  # (m, tn) + (1, tn)
    return jnp.where(y > 0, y, slope * y)                 # f32 epilogue


def _conv_kernel(xs_ref, halo_ref, w_ref, b_ref, o_ref, *, slope):
    nbt, tho, wo, _ = xs_ref.shape
    y = _conv_compute(xs_ref, halo_ref, w_ref, b_ref, slope=slope)
    o_ref[...] = y.reshape(nbt, tho, wo, o_ref.shape[-1]).astype(o_ref.dtype)


def _conv_pool_kernel(xs_ref, halo_ref, w_ref, b_ref, o_ref, *, slope, inv_hw):
    i, ni = pl.program_id(2), pl.num_programs(2)

    @pl.when(i == 0)
    def _():
        o_ref[...] = jnp.zeros_like(o_ref)

    nbt, tho, wo, _ = xs_ref.shape
    y = _conv_compute(xs_ref, halo_ref, w_ref, b_ref, slope=slope)
    # AdaptiveAvgPool2d((1,1)) fused: per-image raw sums, accumulated over the
    # H/reduction grid axis, scaled once at the end (better rounding).
    o_ref[...] += jnp.sum(y.reshape(nbt, tho * wo, -1), axis=1)

    @pl.when(i == ni - 1)
    def _():
        o_ref[...] = o_ref[...] * inv_hw


def _prep_input(x_nhwc):
    """pad(1) + space-to-depth(2) + kw-pair pack: (N,H,W,C) -> (N,H/2+1,W/2,8C)."""
    n, h, w, c = x_nhwc.shape
    assert h % 2 == 0 and w % 2 == 0, "spatial dims must be even for k=4,s=2,p=1"
    xp = jnp.pad(x_nhwc, ((0, 0), (1, 1), (1, 1), (0, 0)))
    hs, ws = h // 2 + 1, w // 2 + 1
    xs = xp.reshape(n, hs, 2, ws, 2, c)
    xs = jnp.transpose(xs, (0, 1, 3, 2, 4, 5)).reshape(n, hs, ws, 4 * c)
    wo = w // 2
    xw = jnp.concatenate([xs[:, :, :wo, :], xs[:, :, 1:, :]], axis=-1)
    return xw.astype(jnp.bfloat16)


def conv_k4s2p1_leaky(x_nhwc, w_packed, b, *, slope=0.2, fuse_pool=False):
    n, h, w, c = x_nhwc.shape
    ho, wo = h // 2, w // 2
    kdim = 8 * c
    cout = w_packed.shape[2]

    # TODO(synk): fuse this pad + space-to-depth + kw-pair pack into the
    # producing conv's epilogue so intermediate activations skip one HBM trip.
    xw = _prep_input(x_nhwc)                       # (n, ho+1, wo, 8c) bf16

    budget, limit = _vmem_budget_and_limit()
    tn = _pick_tn(cout)
    nj = cout // tn
    if fuse_pool:
        nbt, tho = _pick_pool_tiles(n, ho, wo, kdim, tn, budget)
    else:
        nbt, tho = 1, _pick_tho(ho, wo, kdim, tn, budget)
    nb, ni = n // nbt, ho // tho

    in_specs = [
        pl.BlockSpec((nbt, tho, wo, kdim), lambda j, nb_, i: (nb_, i, 0, 0)),
        # 1-row halo from the SAME array (block size 1 => block idx == row idx).
        pl.BlockSpec((nbt, 1, wo, kdim), lambda j, nb_, i: (nb_, i * tho + tho, 0, 0)),
        pl.BlockSpec((2, kdim, tn), lambda j, nb_, i: (0, 0, j)),
        pl.BlockSpec((1, tn), lambda j, nb_, i: (0, j)),
    ]

    flops = 2 * n * ho * wo * (16 * c) * cout
    bytes_accessed = (xw.size * 2 * nj + w_packed.size * 2 + b.size * 4
                      + n * cout * (4 if fuse_pool else ho * wo * 2))
    cost = pl.CostEstimate(flops=int(flops), transcendentals=0,
                           bytes_accessed=int(bytes_accessed))

    if fuse_pool:
        kernel = functools.partial(_conv_pool_kernel, slope=slope,
                                   inv_hw=1.0 / float(ho * wo))
        out_shape = jax.ShapeDtypeStruct((n, cout), jnp.float32)
        out_specs = pl.BlockSpec((nbt, tn), lambda j, nb_, i: (nb_, j))
        dims = ("parallel", "parallel", "arbitrary")     # H axis is a reduction
    else:
        kernel = functools.partial(_conv_kernel, slope=slope)
        out_shape = jax.ShapeDtypeStruct((n, ho, wo, cout), jnp.bfloat16)
        out_specs = pl.BlockSpec((nbt, tho, wo, tn), lambda j, nb_, i: (nb_, i, 0, j))
        dims = ("parallel", "parallel", "parallel")

    return pl.pallas_call(
        kernel,
        out_shape=out_shape,
        grid=(nj, nb, ni),            # Cout tiles outermost => weights resident
        in_specs=in_specs,
        out_specs=out_specs,
        compiler_params=pltpu.CompilerParams(
            dimension_semantics=dims, vmem_limit_bytes=limit),
        cost_estimate=cost,
    )(xw, xw, w_packed, b)


# ---------------------------------------------------------------------------
# Fused head: Linear(C_last,128) + LeakyReLU + Linear(128,1) in one kernel.
# ---------------------------------------------------------------------------
def _head_kernel(x_ref, w1_ref, b1_ref, w2_ref, b2_ref, o_ref, *, slope):
    h = jnp.dot(x_ref[...], w1_ref[...],                   # bf16 x bf16 -> f32
                preferred_element_type=jnp.float32) + b1_ref[...]
    h = jnp.where(h > 0, h, slope * h)
    o_ref[...] = (jnp.dot(h, w2_ref[...], preferred_element_type=jnp.float32)
                  + b2_ref[...]).astype(o_ref.dtype)


def fused_head(x, w1, b1, w2, b2, *, slope=0.2):
    n, c = x.shape
    hid = w1.shape[1]
    # TODO(synk): fold this into the last grid step of the pooled conv to save
    # one launch + the (N, C_last) HBM round trip; the (N, 1) output is a
    # lane-masked store but KB-scale, so left as-is.
    return pl.pallas_call(
        functools.partial(_head_kernel, slope=slope),
        out_shape=jax.ShapeDtypeStruct((n, 1), jnp.float32),
        grid=(1,),
        in_specs=[pl.BlockSpec((n, c), lambda i: (0, 0)),
                  pl.BlockSpec((c, hid), lambda i: (0, 0)),
                  pl.BlockSpec((1, hid), lambda i: (0, 0)),
                  pl.BlockSpec((hid, 1), lambda i: (0, 0)),
                  pl.BlockSpec((1, 1), lambda i: (0, 0))],
        out_specs=pl.BlockSpec((n, 1), lambda i: (0, 0)),
        compiler_params=pltpu.CompilerParams(
            vmem_limit_bytes=_vmem_budget_and_limit()[1]),
    )(x, w1, b1, w2, b2)


# ---------------------------------------------------------------------------
# Parameters: raw (PyTorch layout) init + one-time packing to kernel layout.
# ---------------------------------------------------------------------------
def init_discriminator_params(key, channels, conv_channel_list):
    assert len(conv_channel_list) < 5, "With kernel size = 4, max 4 conv layers"
    channel_list = [channels] + list(conv_channel_list)
    raw = {"convs": []}
    for i in range(len(channel_list) - 1):
        key, k1, k2 = jax.random.split(key, 3)
        cin, cout = channel_list[i], channel_list[i + 1]
        w = jax.random.normal(k1, (cout, cin, 4, 4), jnp.float32) * 0.05
        b = jax.random.normal(k2, (cout,), jnp.float32) * 0.01
        raw["convs"].append((w, b))
    key, k1, k2, k3, k4 = jax.random.split(key, 5)
    c_last = channel_list[-1]
    raw["fc_w"] = jax.random.normal(k1, (c_last, 128), jnp.float32) * 0.05
    raw["fc_b"] = jax.random.normal(k2, (128,), jnp.float32) * 0.01
    raw["out_w"] = jax.random.normal(k3, (128, 1), jnp.float32) * 0.05
    raw["out_b"] = jax.random.normal(k4, (1,), jnp.float32) * 0.01
    return raw


def _pack_conv_weight(w_oihw):
    """OIHW (Cout,Cin,4,4) -> (2, 8*Cin, Cout) bf16 matching s2d+kw-pair layout.

    K index ordering is (dw, di, dj, cin) with dw most significant, matching
    _prep_input's channel packing; the leading axis is dh in {0, 1}.
    """
    cout, cin, kh, kw = w_oihw.shape
    assert kh == 4 and kw == 4
    w = jnp.transpose(w_oihw, (2, 3, 1, 0))        # (kh, kw, cin, cout)
    w = w.reshape(2, 2, 2, 2, cin, cout)           # (dh, di, dw, dj, cin, cout)
    w = jnp.transpose(w, (0, 2, 1, 3, 4, 5))       # (dh, dw, di, dj, cin, cout)
    return w.reshape(2, 8 * cin, cout).astype(jnp.bfloat16)


def pack_params(raw):
    packed = {"convs": [(_pack_conv_weight(w),
                         b.reshape(1, -1).astype(jnp.float32))
                        for (w, b) in raw["convs"]]}
    packed["fc_w"] = raw["fc_w"].astype(jnp.bfloat16)   # bf16 MXU first matmul
    packed["fc_b"] = raw["fc_b"].reshape(1, -1).astype(jnp.float32)
    packed["out_w"] = raw["out_w"].astype(jnp.float32)
    packed["out_b"] = raw["out_b"].reshape(1, -1).astype(jnp.float32)
    return packed


def discriminator_forward(params, x_nchw):
    x = jnp.transpose(x_nchw, (0, 2, 3, 1)).astype(jnp.float32)   # NCHW -> NHWC
    n_conv = len(params["convs"])
    for li, (w_packed, b) in enumerate(params["convs"]):
        x = conv_k4s2p1_leaky(x, w_packed, b, slope=0.2,
                              fuse_pool=(li == n_conv - 1))
    # x: (N, C_last) pooled + flattened, f32
    return fused_head(x.astype(jnp.bfloat16), params["fc_w"], params["fc_b"],
                      params["out_w"], params["out_b"], slope=0.2)


# ---------------------------------------------------------------------------
# Plain-JAX reference (f32) for a correctness sanity check.
# ---------------------------------------------------------------------------
def _reference_forward(raw, x_nchw):
    x = x_nchw.astype(jnp.float32)
    for (w, b) in raw["convs"]:
        x = lax.conv_general_dilated(x, w, window_strides=(2, 2),
                                     padding=((1, 1), (1, 1)),
                                     dimension_numbers=("NCHW", "OIHW", "NCHW"))
        x = x + b.reshape(1, -1, 1, 1)
        x = jnp.where(x > 0, x, 0.2 * x)
    x = jnp.mean(x, axis=(2, 3))
    x = x @ raw["fc_w"] + raw["fc_b"]
    x = jnp.where(x > 0, x, 0.2 * x)
    return x @ raw["out_w"] + raw["out_b"]


if __name__ == "__main__":
    key = jax.random.PRNGKey(0)
    kx, kp = jax.random.split(key)

    batch, channels, spatial = 2, 4, 16
    conv_channel_list = [8, 16, 32]     # small stand-in for default [128, 256, 512]

    x = jax.random.normal(kx, (batch, channels, spatial, spatial), jnp.float32)
    raw = init_discriminator_params(kp, channels, conv_channel_list)
    params = pack_params(raw)           # one-time MXU-ready bf16 weight layout

    fwd = jax.jit(discriminator_forward)
    out = jax.block_until_ready(fwd(params, x))

    assert out.shape == (batch, 1), out.shape
    assert bool(jnp.all(jnp.isfinite(out)))

    ref = jax.block_until_ready(_reference_forward(raw, x))
    err = float(jnp.max(jnp.abs(out - ref)))
    assert err < 5e-3, f"mismatch vs reference: {err}"

    print("KERNEL_OK")
</pallas_src>

<mosaic_0001>
module attributes {stable_mosaic.version = 11 : i64} {
  func.func @_conv_kernel(%arg0: i32, %arg1: i32, %arg2: i32, %arg3: memref<1x8x8x32xbf16, #tpu.memory_space<vmem>>, %arg4: memref<1x1x8x32xbf16, #tpu.memory_space<vmem>>, %arg5: memref<2x32x8xbf16, #tpu.memory_space<vmem>>, %arg6: memref<1x8xf32, #tpu.memory_space<vmem>>, %arg7: memref<1x8x8x8xbf16, #tpu.memory_space<vmem>>) attributes {dimension_semantics = [#tpu.dimension_semantics<parallel>, #tpu.dimension_semantics<parallel>, #tpu.dimension_semantics<parallel>], iteration_bounds = array<i64: 1, 2, 1>, scalar_prefetch = 0 : i64, scratch_operands = 0 : i64, tpu.core_type = #tpu.core_type<tc>, window_params = [{transform_indices = @transform_0, window_bounds = array<i64: 1, 8, 8, 32>}, {transform_indices = @transform_1, window_bounds = array<i64: 1, 1, 8, 32>}, {transform_indices = @transform_2, window_bounds = array<i64: 2, 32, 8>}, {transform_indices = @transform_3, window_bounds = array<i64: 1, 8>}, {transform_indices = @transform_4, window_bounds = array<i64: 1, 8, 8, 8>}]} {
    %c0 = arith.constant 0 : index
    %c0_0 = arith.constant 0 : index
    %c0_1 = arith.constant 0 : index
    %c0_2 = arith.constant 0 : index
    %0 = vector.load %arg3[%c0, %c0_0, %c0_1, %c0_2] : memref<1x8x8x32xbf16, #tpu.memory_space<vmem>>, vector<1x8x8x32xbf16>
    %1 = vector.shape_cast %0 : vector<1x8x8x32xbf16> to vector<64x32xbf16>
    %c0_3 = arith.constant 0 : index
    %c0_4 = arith.constant 0 : index
    %c0_5 = arith.constant 0 : index
    %2 = vector.load %arg5[%c0_3, %c0_4, %c0_5] : memref<2x32x8xbf16, #tpu.memory_space<vmem>>, vector<1x32x8xbf16>
    %3 = vector.shape_cast %2 : vector<1x32x8xbf16> to vector<32x8xbf16>
    %cst = arith.constant dense<0.000000e+00> : vector<64x8xf32>
    %4 = tpu.matmul %1, %3, %cst {dimension_numbers = #tpu.dot_dimension_numbers<[1], [0], [0], [1], [0, 0, 1, 1], [], []>} : vector<64x32xbf16>, vector<32x8xbf16>, vector<64x8xf32> -> vector<64x8xf32>
    %c0_6 = arith.constant 0 : index
    %c1 = arith.constant 1 : index
    %c0_7 = arith.constant 0 : index
    %c0_8 = arith.constant 0 : index
    %5 = vector.load %arg3[%c0_6, %c1, %c0_7, %c0_8] : memref<1x8x8x32xbf16, #tpu.memory_space<vmem>>, vector<1x7x8x32xbf16>
    %c0_9 = arith.constant 0 : index
    %c0_10 = arith.constant 0 : index
    %c0_11 = arith.constant 0 : index
    %c0_12 = arith.constant 0 : index
    %6 = vector.load %arg4[%c0_9, %c0_10, %c0_11, %c0_12] : memref<1x1x8x32xbf16, #tpu.memory_space<vmem>>, vector<1x1x8x32xbf16>
    %7 = tpu.concatenate %5, %6 in 1 : vector<1x7x8x32xbf16>, vector<1x1x8x32xbf16> -> vector<1x8x8x32xbf16>
    %8 = vector.shape_cast %7 : vector<1x8x8x32xbf16> to vector<64x32xbf16>
    %c1_13 = arith.constant 1 : index
    %c0_14 = arith.constant 0 : index
    %c0_15 = arith.constant 0 : index
    %9 = vector.load %arg5[%c1_13, %c0_14, %c0_15] : memref<2x32x8xbf16, #tpu.memory_space<vmem>>, vector<1x32x8xbf16>
    %10 = vector.shape_cast %9 : vector<1x32x8xbf16> to vector<32x8xbf16>
    %cst_16 = arith.constant dense<0.000000e+00> : vector<64x8xf32>
    %11 = tpu.matmul %8, %10, %cst_16 {dimension_numbers = #tpu.dot_dimension_numbers<[1], [0], [0], [1], [0, 0, 1, 1], [], []>} : vector<64x32xbf16>, vector<32x8xbf16>, vector<64x8xf32> -> vector<64x8xf32>
    %12 = arith.addf %4, %11 : vector<64x8xf32>
    %c0_17 = arith.constant 0 : index
    %c0_18 = arith.constant 0 : index
    %13 = vector.load %arg6[%c0_17, %c0_18] : memref<1x8xf32, #tpu.memory_space<vmem>>, vector<1x8xf32>
    %14 = vector.broadcast %13 : vector<1x8xf32> to vector<64x8xf32>
    %15 = arith.addf %12, %14 : vector<64x8xf32>
    %cst_19 = arith.constant 0.000000e+00 : f32
    %16 = vector.broadcast %cst_19 : f32 to vector<64x8xf32>
    %17 = arith.cmpf ogt, %15, %16 : vector<64x8xf32>
    %cst_20 = arith.constant 2.000000e-01 : f32
    %18 = vector.broadcast %cst_20 : f32 to vector<64x8xf32>
    %19 = arith.mulf %18, %15 : vector<64x8xf32>
    %20 = arith.select %17, %15, %19 : vector<64x8xi1>, vector<64x8xf32>
    %21 = vector.shape_cast %20 : vector<64x8xf32> to vector<1x8x8x8xf32>
    %22 = arith.truncf %21 : vector<1x8x8x8xf32> to vector<1x8x8x8xbf16>
    %c0_21 = arith.constant 0 : index
    %c0_22 = arith.constant 0 : index
    %c0_23 = arith.constant 0 : index
    %c0_24 = arith.constant 0 : index
    %23 = vector.load %arg7[%c0_21, %c0_22, %c0_23, %c0_24] : memref<1x8x8x8xbf16, #tpu.memory_space<vmem>>, vector<1x8x8x8xbf16>
    tpu.vector_store %arg7[%c0_21, %c0_22, %c0_23, %c0_24], %22 {strides = array<i32>} : memref<1x8x8x8xbf16, #tpu.memory_space<vmem>>, vector<1x8x8x8xbf16>,
    return
  }
  func.func @transform_0(%arg0: i32, %arg1: i32, %arg2: i32) -> (i32, i32, i32, i32) {
    %c0_i32 = arith.constant 0 : i32
    %c0_i32_0 = arith.constant 0 : i32
    %c0_i32_1 = arith.constant 0 : i32
    return %arg1, %arg2, %c0_i32, %c0_i32_0 : i32, i32, i32, i32
  }
  func.func @transform_1(%arg0: i32, %arg1: i32, %arg2: i32) -> (i32, i32, i32, i32) {
    %c8_i32 = arith.constant 8 : i32
    %0 = arith.muli %arg2, %c8_i32 : i32
    %c8_i32_0 = arith.constant 8 : i32
    %1 = arith.addi %0, %c8_i32_0 : i32
    %c0_i32 = arith.constant 0 : i32
    %c0_i32_1 = arith.constant 0 : i32
    %c0_i32_2 = arith.constant 0 : i32
    return %arg1, %1, %c0_i32, %c0_i32_1 : i32, i32, i32, i32
  }
  func.func @transform_2(%arg0: i32, %arg1: i32, %arg2: i32) -> (i32, i32, i32) {
    %c0_i32 = arith.constant 0 : i32
    %c0_i32_0 = arith.constant 0 : i32
    %c0_i32_1 = arith.constant 0 : i32
    return %c0_i32, %c0_i32_0, %arg0 : i32, i32, i32
  }
  func.func @transform_3(%arg0: i32, %arg1: i32, %arg2: i32) -> (i32, i32) {
    %c0_i32 = arith.constant 0 : i32
    %c0_i32_0 = arith.constant 0 : i32
    return %c0_i32, %arg0 : i32, i32
  }
  func.func @transform_4(%arg0: i32, %arg1: i32, %arg2: i32) -> (i32, i32, i32, i32) {
    %c0_i32 = arith.constant 0 : i32
    %c0_i32_0 = arith.constant 0 : i32
    return %arg1, %arg2, %c0_i32, %arg0 : i32, i32, i32, i32
  }
}

module attributes {stable_mosaic.version = 11 : i64} {
  func.func @_conv_kernel(%arg0: i32, %arg1: i32, %arg2: i32, %arg3: memref<1x4x4x64xbf16, #tpu.memory_space<vmem>>, %arg4: memref<1x1x4x64xbf16, #tpu.memory_space<vmem>>, %arg5: memref<2x64x16xbf16, #tpu.memory_space<vmem>>, %arg6: memref<1x16xf32, #tpu.memory_space<vmem>>, %arg7: memref<1x4x4x16xbf16, #tpu.memory_space<vmem>>) attributes {dimension_semantics = [#tpu.dimension_semantics<parallel>, #tpu.dimension_semantics<parallel>, #tpu.dimension_semantics<parallel>], iteration_bounds = array<i64: 1, 2, 1>, scalar_prefetch = 0 : i64, scratch_operands = 0 : i64, tpu.core_type = #tpu.core_type<tc>, window_params = [{transform_indices = @transform_0, window_bounds = array<i64: 1, 4, 4, 64>}, {transform_indices = @transform_1, window_bounds = array<i64: 1, 1, 4, 64>}, {transform_indices = @transform_2, window_bounds = array<i64: 2, 64, 16>}, {transform_indices = @transform_3, window_bounds = array<i64: 1, 16>}, {transform_indices = @transform_4, window_bounds = array<i64: 1, 4, 4, 16>}]} {
    %c0 = arith.constant 0 : index
    %c0_0 = arith.constant 0 : index
    %c0_1 = arith.constant 0 : index
    %c0_2 = arith.constant 0 : index
    %0 = vector.load %arg3[%c0, %c0_0, %c0_1, %c0_2] : memref<1x4x4x64xbf16, #tpu.memory_space<vmem>>, vector<1x4x4x64xbf16>
    %1 = vector.shape_cast %0 : vector<1x4x4x64xbf16> to vector<16x64xbf16>
    %c0_3 = arith.constant 0 : index
    %c0_4 = arith.constant 0 : index
    %c0_5 = arith.constant 0 : index
    %2 = vector.load %arg5[%c0_3, %c0_4, %c0_5] : memref<2x64x16xbf16, #tpu.memory_space<vmem>>, vector<1x64x16xbf16>
    %3 = vector.shape_cast %2 : vector<1x64x16xbf16> to vector<64x16xbf16>
    %cst = arith.constant dense<0.000000e+00> : vector<16x16xf32>
    %4 = tpu.matmul %1, %3, %cst {dimension_numbers = #tpu.dot_dimension_numbers<[1], [0], [0], [1], [0, 0, 1, 1], [], []>} : vector<16x64xbf16>, vector<64x16xbf16>, vector<16x16xf32> -> vector<16x16xf32>
    %c0_6 = arith.constant 0 : index
    %c1 = arith.constant 1 : index
    %c0_7 = arith.constant 0 : index
    %c0_8 = arith.constant 0 : index
    %5 = vector.load %arg3[%c0_6, %c1, %c0_7, %c0_8] : memref<1x4x4x64xbf16, #tpu.memory_space<vmem>>, vector<1x3x4x64xbf16>
    %c0_9 = arith.constant 0 : index
    %c0_10 = arith.constant 0 : index
    %c0_11 = arith.constant 0 : index
    %c0_12 = arith.constant 0 : index
    %6 = vector.load %arg4[%c0_9, %c0_10, %c0_11, %c0_12] : memref<1x1x4x64xbf16, #tpu.memory_space<vmem>>, vector<1x1x4x64xbf16>
    %7 = tpu.concatenate %5, %6 in 1 : vector<1x3x4x64xbf16>, vector<1x1x4x64xbf16> -> vector<1x4x4x64xbf16>
    %8 = vector.shape_cast %7 : vector<1x4x4x64xbf16> to vector<16x64xbf16>
    %c1_13 = arith.constant 1 : index
    %c0_14 = arith.constant 0 : index
    %c0_15 = arith.constant 0 : index
    %9 = vector.load %arg5[%c1_13, %c0_14, %c0_15] : memref<2x64x16xbf16, #tpu.memory_space<vmem>>, vector<1x64x16xbf16>
    %10 = vector.shape_cast %9 : vector<1x64x16xbf16> to vector<64x16xbf16>
    %cst_16 = arith.constant dense<0.000000e+00> : vector<16x16xf32>
    %11 = tpu.matmul %8, %10, %cst_16 {dimension_numbers = #tpu.dot_dimension_numbers<[1], [0], [0], [1], [0, 0, 1, 1], [], []>} : vector<16x64xbf16>, vector<64x16xbf16>, vector<16x16xf32> -> vector<16x16xf32>
    %12 = arith.addf %4, %11 : vector<16x16xf32>
    %c0_17 = arith.constant 0 : index
    %c0_18 = arith.constant 0 : index
    %13 = vector.load %arg6[%c0_17, %c0_18] : memref<1x16xf32, #tpu.memory_space<vmem>>, vector<1x16xf32>
    %14 = vector.broadcast %13 : vector<1x16xf32> to vector<16x16xf32>
    %15 = arith.addf %12, %14 : vector<16x16xf32>
    %cst_19 = arith.constant 0.000000e+00 : f32
    %16 = vector.broadcast %cst_19 : f32 to vector<16x16xf32>
    %17 = arith.cmpf ogt, %15, %16 : vector<16x16xf32>
    %cst_20 = arith.constant 2.000000e-01 : f32
    %18 = vector.broadcast %cst_20 : f32 to vector<16x16xf32>
    %19 = arith.mulf %18, %15 : vector<16x16xf32>
    %20 = arith.select %17, %15, %19 : vector<16x16xi1>, vector<16x16xf32>
    %21 = vector.shape_cast %20 : vector<16x16xf32> to vector<1x4x4x16xf32>
    %22 = arith.truncf %21 : vector<1x4x4x16xf32> to vector<1x4x4x16xbf16>
    %c0_21 = arith.constant 0 : index
    %c0_22 = arith.constant 0 : index
    %c0_23 = arith.constant 0 : index
    %c0_24 = arith.constant 0 : index
    %23 = vector.load %arg7[%c0_21, %c0_22, %c0_23, %c0_24] : memref<1x4x4x16xbf16, #tpu.memory_space<vmem>>, vector<1x4x4x16xbf16>
    tpu.vector_store %arg7[%c0_21, %c0_22, %c0_23, %c0_24], %22 {strides = array<i32>} : memref<1x4x4x16xbf16, #tpu.memory_space<vmem>>, vector<1x4x4x16xbf16>,
    return
  }
  func.func @transform_0(%arg0: i32, %arg1: i32, %arg2: i32) -> (i32, i32, i32, i32) {
    %c0_i32 = arith.constant 0 : i32
    %c0_i32_0 = arith.constant 0 : i32
    %c0_i32_1 = arith.constant 0 : i32
    return %arg1, %arg2, %c0_i32, %c0_i32_0 : i32, i32, i32, i32
  }
  func.func @transform_1(%arg0: i32, %arg1: i32, %arg2: i32) -> (i32, i32, i32, i32) {
    %c4_i32 = arith.constant 4 : i32
    %0 = arith.muli %arg2, %c4_i32 : i32
    %c4_i32_0 = arith.constant 4 : i32
    %1 = arith.addi %0, %c4_i32_0 : i32
    %c0_i32 = arith.constant 0 : i32
    %c0_i32_1 = arith.constant 0 : i32
    %c0_i32_2 = arith.constant 0 : i32
    return %arg1, %1, %c0_i32, %c0_i32_1 : i32, i32, i32, i32
  }
  func.func @transform_2(%arg0: i32, %arg1: i32, %arg2: i32) -> (i32, i32, i32) {
    %c0_i32 = arith.constant 0 : i32
    %c0_i32_0 = arith.constant 0 : i32
    %c0_i32_1 = arith.constant 0 : i32
    return %c0_i32, %c0_i32_0, %arg0 : i32, i32, i32
  }
  func.func @transform_3(%arg0: i32, %arg1: i32, %arg2: i32) -> (i32, i32) {
    %c0_i32 = arith.constant 0 : i32
    %c0_i32_0 = arith.constant 0 : i32
    return %c0_i32, %arg0 : i32, i32
  }
  func.func @transform_4(%arg0: i32, %arg1: i32, %arg2: i32) -> (i32, i32, i32, i32) {
    %c0_i32 = arith.constant 0 : i32
    %c0_i32_0 = arith.constant 0 : i32
    return %arg1, %arg2, %c0_i32, %arg0 : i32, i32, i32, i32
  }
}

module attributes {stable_mosaic.version = 11 : i64} {
  func.func @_conv_pool_kernel(%arg0: i32, %arg1: i32, %arg2: i32, %arg3: memref<2x2x2x128xbf16, #tpu.memory_space<vmem>>, %arg4: memref<2x1x2x128xbf16, #tpu.memory_space<vmem>>, %arg5: memref<2x128x32xbf16, #tpu.memory_space<vmem>>, %arg6: memref<1x32xf32, #tpu.memory_space<vmem>>, %arg7: memref<2x32xf32, #tpu.memory_space<vmem>>) attributes {dimension_semantics = [#tpu.dimension_semantics<parallel>, #tpu.dimension_semantics<parallel>, #tpu.dimension_semantics<arbitrary>], iteration_bounds = array<i64: 1, 1, 1>, scalar_prefetch = 0 : i64, scratch_operands = 0 : i64, tpu.core_type = #tpu.core_type<tc>, window_params = [{transform_indices = @transform_0, window_bounds = array<i64: 2, 2, 2, 128>}, {transform_indices = @transform_1, window_bounds = array<i64: 2, 1, 2, 128>}, {transform_indices = @transform_2, window_bounds = array<i64: 2, 128, 32>}, {transform_indices = @transform_3, window_bounds = array<i64: 1, 32>}, {transform_indices = @transform_4, window_bounds = array<i64: 2, 32>}]} {
    %c0_i32 = arith.constant 0 : i32
    %0 = arith.cmpi eq, %arg2, %c0_i32 : i32
    %1 = arith.extui %0 : i1 to i32
    %c0_i32_0 = arith.constant 0 : i32
    %2 = arith.cmpi ne, %1, %c0_i32_0 : i32
    scf.if %2 {
      %cst_29 = arith.constant 0.000000e+00 : f32
      %32 = vector.broadcast %cst_29 : f32 to vector<2x32xf32>
      %c0_30 = arith.constant 0 : index
      %c0_31 = arith.constant 0 : index
      %33 = vector.load %arg7[%c0_30, %c0_31] : memref<2x32xf32, #tpu.memory_space<vmem>>, vector<2x32xf32>
      tpu.vector_store %arg7[%c0_30, %c0_31], %32 {strides = array<i32>} : memref<2x32xf32, #tpu.memory_space<vmem>>, vector<2x32xf32>,
    } else {
    }
    %c0 = arith.constant 0 : index
    %c0_1 = arith.constant 0 : index
    %c0_2 = arith.constant 0 : index
    %c0_3 = arith.constant 0 : index
    %3 = vector.load %arg3[%c0, %c0_1, %c0_2, %c0_3] : memref<2x2x2x128xbf16, #tpu.memory_space<vmem>>, vector<2x2x2x128xbf16>
    %4 = vector.shape_cast %3 : vector<2x2x2x128xbf16> to vector<8x128xbf16>
    %c0_4 = arith.constant 0 : index
    %c0_5 = arith.constant 0 : index
    %c0_6 = arith.constant 0 : index
    %5 = vector.load %arg5[%c0_4, %c0_5, %c0_6] : memref<2x128x32xbf16, #tpu.memory_space<vmem>>, vector<1x128x32xbf16>
    %6 = vector.shape_cast %5 : vector<1x128x32xbf16> to vector<128x32xbf16>
    %cst = arith.constant dense<0.000000e+00> : vector<8x32xf32>
    %7 = tpu.matmul %4, %6, %cst {dimension_numbers = #tpu.dot_dimension_numbers<[1], [0], [0], [1], [0, 0, 1, 1], [], []>} : vector<8x128xbf16>, vector<128x32xbf16>, vector<8x32xf32> -> vector<8x32xf32>
    %c0_7 = arith.constant 0 : index
    %c1 = arith.constant 1 : index
    %c0_8 = arith.constant 0 : index
    %c0_9 = arith.constant 0 : index
    %8 = vector.load %arg3[%c0_7, %c1, %c0_8, %c0_9] : memref<2x2x2x128xbf16, #tpu.memory_space<vmem>>, vector<2x1x2x128xbf16>
    %c0_10 = arith.constant 0 : index
    %c0_11 = arith.constant 0 : index
    %c0_12 = arith.constant 0 : index
    %c0_13 = arith.constant 0 : index
    %9 = vector.load %arg4[%c0_10, %c0_11, %c0_12, %c0_13] : memref<2x1x2x128xbf16, #tpu.memory_space<vmem>>, vector<2x1x2x128xbf16>
    %10 = tpu.concatenate %8, %9 in 1 : vector<2x1x2x128xbf16>, vector<2x1x2x128xbf16> -> vector<2x2x2x128xbf16>
    %11 = vector.shape_cast %10 : vector<2x2x2x128xbf16> to vector<8x128xbf16>
    %c1_14 = arith.constant 1 : index
    %c0_15 = arith.constant 0 : index
    %c0_16 = arith.constant 0 : index
    %12 = vector.load %arg5[%c1_14, %c0_15, %c0_16] : memref<2x128x32xbf16, #tpu.memory_space<vmem>>, vector<1x128x32xbf16>
    %13 = vector.shape_cast %12 : vector<1x128x32xbf16> to vector<128x32xbf16>
    %cst_17 = arith.constant dense<0.000000e+00> : vector<8x32xf32>
    %14 = tpu.matmul %11, %13, %cst_17 {dimension_numbers = #tpu.dot_dimension_numbers<[1], [0], [0], [1], [0, 0, 1, 1], [], []>} : vector<8x128xbf16>, vector<128x32xbf16>, vector<8x32xf32> -> vector<8x32xf32>
    %15 = arith.addf %7, %14 : vector<8x32xf32>
    %c0_18 = arith.constant 0 : index
    %c0_19 = arith.constant 0 : index
    %16 = vector.load %arg6[%c0_18, %c0_19] : memref<1x32xf32, #tpu.memory_space<vmem>>, vector<1x32xf32>
    %17 = vector.broadcast %16 : vector<1x32xf32> to vector<8x32xf32>
    %18 = arith.addf %15, %17 : vector<8x32xf32>
    %cst_20 = arith.constant 0.000000e+00 : f32
    %19 = vector.broadcast %cst_20 : f32 to vector<8x32xf32>
    %20 = arith.cmpf ogt, %18, %19 : vector<8x32xf32>
    %cst_21 = arith.constant 2.000000e-01 : f32
    %21 = vector.broadcast %cst_21 : f32 to vector<8x32xf32>
    %22 = arith.mulf %21, %18 : vector<8x32xf32>
    %23 = arith.select %20, %18, %22 : vector<8x32xi1>, vector<8x32xf32>
    %c0_22 = arith.constant 0 : index
    %c0_23 = arith.constant 0 : index
    %24 = vector.load %arg7[%c0_22, %c0_23] : memref<2x32xf32, #tpu.memory_space<vmem>>, vector<2x32xf32>
    %25 = vector.shape_cast %23 : vector<8x32xf32> to vector<2x4x32xf32>
    %cst_24 = arith.constant dense<0.000000e+00> : vector<2x32xf32>
    %26 = vector.multi_reduction <add>, %25, %cst_24 [1] : vector<2x4x32xf32> to vector<2x32xf32>
    %27 = arith.addf %24, %26 : vector<2x32xf32>
    %c0_25 = arith.constant 0 : index
    %c0_26 = arith.constant 0 : index
    %28 = vector.load %arg7[%c0_25, %c0_26] : memref<2x32xf32, #tpu.memory_space<vmem>>, vector<2x32xf32>
    tpu.vector_store %arg7[%c0_25, %c0_26], %27 {strides = array<i32>} : memref<2x32xf32, #tpu.memory_space<vmem>>, vector<2x32xf32>,
    %c0_i32_27 = arith.constant 0 : i32
    %29 = arith.cmpi eq, %arg2, %c0_i32_27 : i32
    %30 = arith.extui %29 : i1 to i32
    %c0_i32_28 = arith.constant 0 : i32
    %31 = arith.cmpi ne, %30, %c0_i32_28 : i32
    scf.if %31 {
      %c0_29 = arith.constant 0 : index
      %c0_30 = arith.constant 0 : index
      %32 = vector.load %arg7[%c0_29, %c0_30] : memref<2x32xf32, #tpu.memory_space<vmem>>, vector<2x32xf32>
      %cst_31 = arith.constant 2.500000e-01 : f32
      %33 = vector.broadcast %cst_31 : f32 to vector<2x32xf32>
      %34 = arith.mulf %32, %33 : vector<2x32xf32>
      %c0_32 = arith.constant 0 : index
      %c0_33 = arith.constant 0 : index
      %35 = vector.load %arg7[%c0_32, %c0_33] : memref<2x32xf32, #tpu.memory_space<vmem>>, vector<2x32xf32>
      tpu.vector_store %arg7[%c0_32, %c0_33], %34 {strides = array<i32>} : memref<2x32xf32, #tpu.memory_space<vmem>>, vector<2x32xf32>,
    } else {
    }
    return
  }
  func.func @transform_0(%arg0: i32, %arg1: i32, %arg2: i32) -> (i32, i32, i32, i32) {
    %c0_i32 = arith.constant 0 : i32
    %c0_i32_0 = arith.constant 0 : i32
    %c0_i32_1 = arith.constant 0 : i32
    return %arg1, %arg2, %c0_i32, %c0_i32_0 : i32, i32, i32, i32
  }
  func.func @transform_1(%arg0: i32, %arg1: i32, %arg2: i32) -> (i32, i32, i32, i32) {
    %c2_i32 = arith.constant 2 : i32
    %0 = arith.muli %arg2, %c2_i32 : i32
    %c2_i32_0 = arith.constant 2 : i32
    %1 = arith.addi %0, %c2_i32_0 : i32
    %c0_i32 = arith.constant 0 : i32
    %c0_i32_1 = arith.constant 0 : i32
    %c0_i32_2 = arith.constant 0 : i32
    return %arg1, %1, %c0_i32, %c0_i32_1 : i32, i32, i32, i32
  }
  func.func @transform_2(%arg0: i32, %arg1: i32, %arg2: i32) -> (i32, i32, i32) {
    %c0_i32 = arith.constant 0 : i32
    %c0_i32_0 = arith.constant 0 : i32
    %c0_i32_1 = arith.constant 0 : i32
    return %c0_i32, %c0_i32_0, %arg0 : i32, i32, i32
  }
  func.func @transform_3(%arg0: i32, %arg1: i32, %arg2: i32) -> (i32, i32) {
    %c0_i32 = arith.constant 0 : i32
    %c0_i32_0 = arith.constant 0 : i32
    return %c0_i32, %arg0 : i32, i32
  }
  func.func @transform_4(%arg0: i32, %arg1: i32, %arg2: i32) -> (i32, i32) {
    %c0_i32 = arith.constant 0 : i32
    return %arg1, %arg0 : i32, i32
  }
}

module attributes {stable_mosaic.version = 11 : i64} {
  func.func @_head_kernel(%arg0: i32, %arg1: memref<2x32xbf16, #tpu.memory_space<vmem>>, %arg2: memref<32x128xbf16, #tpu.memory_space<vmem>>, %arg3: memref<1x128xf32, #tpu.memory_space<vmem>>, %arg4: memref<128x1xf32, #tpu.memory_space<vmem>>, %arg5: memref<1x1xf32, #tpu.memory_space<vmem>>, %arg6: memref<2x1xf32, #tpu.memory_space<vmem>>) attributes {dimension_semantics = [#tpu.dimension_semantics<arbitrary>], iteration_bounds = array<i64: 1>, scalar_prefetch = 0 : i64, scratch_operands = 0 : i64, tpu.core_type = #tpu.core_type<tc>, window_params = [{pipeline_mode = #tpu.pipeline_mode<synchronous>, transform_indices = @transform_0, window_bounds = array<i64: 2, 32>}, {pipeline_mode = #tpu.pipeline_mode<synchronous>, transform_indices = @transform_1, window_bounds = array<i64: 32, 128>}, {pipeline_mode = #tpu.pipeline_mode<synchronous>, transform_indices = @transform_2, window_bounds = array<i64: 1, 128>}, {pipeline_mode = #tpu.pipeline_mode<synchronous>, transform_indices = @transform_3, window_bounds = array<i64: 128, 1>}, {pipeline_mode = #tpu.pipeline_mode<synchronous>, transform_indices = @transform_4, window_bounds = array<i64: 1, 1>}, {pipeline_mode = #tpu.pipeline_mode<synchronous>, transform_indices = @transform_5, window_bounds = array<i64: 2, 1>}]} {
    %c0 = arith.constant 0 : index
    %c0_0 = arith.constant 0 : index
    %0 = vector.load %arg1[%c0, %c0_0] : memref<2x32xbf16, #tpu.memory_space<vmem>>, vector<2x32xbf16>
    %c0_1 = arith.constant 0 : index
    %c0_2 = arith.constant 0 : index
    %1 = vector.load %arg2[%c0_1, %c0_2] : memref<32x128xbf16, #tpu.memory_space<vmem>>, vector<32x128xbf16>
    %cst = arith.constant dense<0.000000e+00> : vector<2x128xf32>
    %2 = tpu.matmul %0, %1, %cst {dimension_numbers = #tpu.dot_dimension_numbers<[1], [0], [0], [1], [0, 0, 1, 1], [], []>} : vector<2x32xbf16>, vector<32x128xbf16>, vector<2x128xf32> -> vector<2x128xf32>
    %c0_3 = arith.constant 0 : index
    %c0_4 = arith.constant 0 : index
    %3 = vector.load %arg3[%c0_3, %c0_4] : memref<1x128xf32, #tpu.memory_space<vmem>>, vector<1x128xf32>
    %4 = vector.broadcast %3 : vector<1x128xf32> to vector<2x128xf32>
    %5 = arith.addf %2, %4 : vector<2x128xf32>
    %cst_5 = arith.constant 0.000000e+00 : f32
    %6 = vector.broadcast %cst_5 : f32 to vector<2x128xf32>
    %7 = arith.cmpf ogt, %5, %6 : vector<2x128xf32>
    %cst_6 = arith.constant 2.000000e-01 : f32
    %8 = vector.broadcast %cst_6 : f32 to vector<2x128xf32>
    %9 = arith.mulf %8, %5 : vector<2x128xf32>
    %10 = arith.select %7, %5, %9 : vector<2x128xi1>, vector<2x128xf32>
    %c0_7 = arith.constant 0 : index
    %c0_8 = arith.constant 0 : index
    %11 = vector.load %arg4[%c0_7, %c0_8] : memref<128x1xf32, #tpu.memory_space<vmem>>, vector<128x1xf32>
    %cst_9 = arith.constant dense<0.000000e+00> : vector<2x1xf32>
    %12 = tpu.matmul %10, %11, %cst_9 {dimension_numbers = #tpu.dot_dimension_numbers<[1], [0], [0], [1], [0, 0, 1, 1], [], []>} : vector<2x128xf32>, vector<128x1xf32>, vector<2x1xf32> -> vector<2x1xf32>
    %c0_10 = arith.constant 0 : index
    %c0_11 = arith.constant 0 : index
    %13 = vector.load %arg5[%c0_10, %c0_11] : memref<1x1xf32, #tpu.memory_space<vmem>>, vector<1x1xf32>
    %14 = vector.broadcast %13 : vector<1x1xf32> to vector<2x1xf32>
    %15 = arith.addf %12, %14 : vector<2x1xf32>
    %c0_12 = arith.constant 0 : index
    %c0_13 = arith.constant 0 : index
    %16 = vector.load %arg6[%c0_12, %c0_13] : memref<2x1xf32, #tpu.memory_space<vmem>>, vector<2x1xf32>
    tpu.vector_store %arg6[%c0_12, %c0_13], %15 {strides = array<i32>} : memref<2x1xf32, #tpu.memory_space<vmem>>, vector<2x1xf32>,
    return
  }
  func.func @transform_0(%arg0: i32) -> (i32, i32) {
    %c0_i32 = arith.constant 0 : i32
    %c0_i32_0 = arith.constant 0 : i32
    %c0_i32_1 = arith.constant 0 : i32
    return %c0_i32, %c0_i32_0 : i32, i32
  }
  func.func @transform_1(%arg0: i32) -> (i32, i32) {
    %c0_i32 = arith.constant 0 : i32
    %c0_i32_0 = arith.constant 0 : i32
    %c0_i32_1 = arith.constant 0 : i32
    return %c0_i32, %c0_i32_0 : i32, i32
  }
  func.func @transform_2(%arg0: i32) -> (i32, i32) {
    %c0_i32 = arith.constant 0 : i32
    %c0_i32_0 = arith.constant 0 : i32
    %c0_i32_1 = arith.constant 0 : i32
    return %c0_i32, %c0_i32_0 : i32, i32
  }
  func.func @transform_3(%arg0: i32) -> (i32, i32) {
    %c0_i32 = arith.constant 0 : i32
    %c0_i32_0 = arith.constant 0 : i32
    %c0_i32_1 = arith.constant 0 : i32
    return %c0_i32, %c0_i32_0 : i32, i32
  }
  func.func @transform_4(%arg0: i32) -> (i32, i32) {
    %c0_i32 = arith.constant 0 : i32
    %c0_i32_0 = arith.constant 0 : i32
    %c0_i32_1 = arith.constant 0 : i32
    return %c0_i32, %c0_i32_0 : i32, i32
  }
  func.func @transform_5(%arg0: i32) -> (i32, i32) {
    %c0_i32 = arith.constant 0 : i32
    %c0_i32_0 = arith.constant 0 : i32
    %c0_i32_1 = arith.constant 0 : i32
    return %c0_i32, %c0_i32_0 : i32, i32
  }
}

</mosaic_0001>

<bundles_post_ra>
// kernel: discriminator_forward.4
= control target key start
LH: loop header
LB: loop body
LE: loop exit
PB: predicated region body
PF: predicated region fallthrough
CT: control target
= control target key end

     0   :  { %s896_s15 = smov 0   ;;  %s898_s16 = smov 0   ;;  %s987_s0 = inlined_call_operand.vmem [shape: bf16[2,9,8,32], index: 0, kind: input, shape index: {}, may-alias: {0,1}]   ;;  %s988_s1 = inlined_call_operand.vmem [shape: bf16[2,9,8,32], index: 1, kind: input, shape index: {}, may-alias: {0,1}]   ;;  %s989_s2 = inlined_call_operand.vmem [shape: bf16[2,32,8], index: 2, kind: input, shape index: {}]   ;;  %s990_s3 = inlined_call_operand.vmem [shape: f32[1,8], index: 3, kind: input, shape index: {}]   ;;  %s991_s4 = inlined_call_operand.vmem [shape: bf16[2,8,8,8], index: 4, kind: output, shape index: {}]  }
   0x1   :  { %s900_s17 = smov 0  }
   0x2 LB: > { %s29_s18 = sadd.s32 1, %s865_s16  ;;  %p726_p0 = scmp.ge.s32.totalorder %s869_s17, 1  ;;  %s869_s17 = sphi %s900_s17, %s14_s17   ;;  %s865_s16 = sphi %s898_s16, %s993_s16   ;;  %s861_s15 = sphi %s896_s15, %s992_s15  }
   0x3   : > { %p31_p1 = scmp.ge.s32.totalorder %s29_s18, 2  ;;  %p240_p2 = scmp.lt.s32.totalorder %s869_s17, 3 }
   0x5   : > { %s995_s18 = smov (%p31_p1, %s29_s18), 0  ;;  %p241_p3 = pnand %p726_p0, %p240_p2 }
   0x6   : > { %p303_p4 = scmp.lt.s32.totalorder (!%p241_p3), %s861_s15, 1 }
   0x7   : > { %244 = sbr.rel (%p241_p3) target bundleno = 187 (0xbb), region = 36 }
   0xc   : > { %v814_v0 = vld [vmem:[%s989_s2 + $0x18] sm:$0xff]  ;;  %v808_v1 = vld [vmem:[%s989_s2 + $0x8] sm:$0xff]  ;;  %v813_v2 = vld [vmem:[%s989_s2 + $0x10] sm:$0xff]  ;;  %s997_s15 = smov (!%p303_p4, %s861_s15), 1  ;;  %vm407_vm0 = vcmask 261120   ;;  %vm566_vm2 = vcmask 60416  }
   0xd   : > { %426 = vmatpush.bf16.msra.mxu0 %v814_v0  ;;  %815 = vmatpush.bf16.msra.mxu2 %v814_v0  ;;  %v807_v3 = vld [vmem:[%s989_s2] sm:$0xff]  ;;  %s819_s27 = smul.u32 36, %s997_s15  ;;  %s802_s11 = sshll.u32 %s997_s15, 5 }
   0xe   : > { %499 = vmatpush.bf16.msra.mxu1 %v808_v1  ;;  %817 = vmatpush.bf16.msra.mxu3 %v808_v1  ;;  %v946_v15 = vld [vmem:[%s990_s3] ss:$0 sm:$0xff]  ;;  %s953_s14 = scalar_lea.vmem %s991_s4, %s802_s11 }
   0xf   : > { %s310_s30 = scalar_lea.vmem %s987_s0, %s819_s27  ;;  %s801_s5 = sadd.s32 32, %s819_s27 }
  0x10   : > { %v809_v4 = vld [vmem:[%s310_s30 + $0x4] sm:$0xff]  ;;  %v811_v5 = vld [vmem:[%s310_s30 + $0x14] sm:$0xff]  ;;  %s325_s8 = scalar_lea.vmem %s988_s1, %s801_s5  ;;  %v756_v8 = vld [vmem:[%s310_s30 + $0x1c] sm:$0xf] }
  0x11   : > { %427 = vmatpush.bf16.msra.mxu0 %v813_v2  ;;  %816 = vmatpush.bf16.msra.mxu2 %v813_v2  ;;  %v803_v6 = vld [vmem:[%s310_s30] sm:$0xff]  ;;  %v805_v7 = vld [vmem:[%s310_s30 + $0x10] sm:$0xff]  ;;  %v804_v12 = vld [vmem:[%s310_s30 + $0x8] sm:$0xff] }
  0x12   : > { %500 = vmatpush.bf16.msra.mxu1 %v807_v3  ;;  %818 = vmatpush.bf16.msra.mxu3 %v807_v3  ;;  %v812_v9 = vld [vmem:[%s325_s8 - $0x4] sm:$0xf0]  ;;  %v810_v10 = vld [vmem:[%s310_s30 + $0xc] sm:$0xff]  ;;  %v806_v13 = vld [vmem:[%s310_s30 + $0x18] sm:$0xff] }
  0x13   : > { %v757_v11 = vor.u32 %v812_v9, %v756_v8 }
  0x14   : > { %766 = vmatmul.msk.bf16.vlgmr.msra.gmra.mxu0 %vm407_vm0, %v809_v4  ;;  %768 = vmatmul.msk.bf16.vlgmr.msra.gmra.mxu2 %vm407_vm0, %v811_v5 }
  0x15   : > { %794 = vmatmul.msk.bf16.vlgmr.msra.gmra.mxu1 %vm407_vm0, %v803_v6  ;;  %796 = vmatmul.msk.bf16.vlgmr.msra.gmra.mxu3 %vm407_vm0, %v805_v7 }
  0x24   : > { %767 = vmatmul.msk.bf16.gmra.mxu0 %vm407_vm0, %v810_v10  ;;  %769 = vmatmul.msk.bf16.gmra.mxu2 %vm407_vm0, %v757_v11 }
  0x25   : > { %795 = vmatmul.msk.bf16.gmra.mxu1 %vm407_vm0, %v804_v12  ;;  %797 = vmatmul.msk.bf16.gmra.mxu3 %vm407_vm0, %v806_v13 }
  0x91   : > { %v429_v14 = vpop.f32.mrf.mxu0 }
  0x92   : > { %v502_v16 = vpop.f32.mrf.mxu1 }
  0x93   : > { %v503_v17 = vadd.f32 %v502_v16, %v429_v14 }
  0x95   : > { %v526_v18 = vadd.f32 %v946_v15, %v503_v17 }
  0x97   : > { %vm534_vm1 = vcmp.gt.f32.partialorder %v526_v18, 0.0  ;;  %v542_v19 = vmul.f32 0.2, %v526_v18  ;;  %v439_v20 = vpop.f32.mrf.mxu2 }
  0x98   : > { %v512_v21 = vpop.f32.mrf.mxu3 }
  0x99   : > { %v550_v22 = vsel %vm534_vm1, %v526_v18, %v542_v19  ;;  %v513_v23 = vadd.f32 %v512_v21, %v439_v20  ;;  %v431_v24 = vpop.f32.mrf.mxu0 }
  0x9a   : > { %v558_v25 = vpack.c.bf16 %v550_v22, %v550_v22  ;;  %v504_v26 = vpop.f32.mrf.mxu1 }
  0x9b   : > { %v530_v27 = vadd.f32 %v946_v15, %v513_v23  ;;  %v505_v28 = vadd.f32 %v504_v26, %v431_v24 }
  0x9c   : > { %567 = vst.msk [vmem:[%s953_s14] sm:$0xf] %vm566_vm2, %v558_v25 }
  0x9d   : > { %vm538_vm3 = vcmp.gt.f32.partialorder %v530_v27, 0.0  ;;  %v546_v29 = vmul.f32 0.2, %v530_v27  ;;  %v527_v30 = vadd.f32 %v946_v15, %v505_v28 }
  0x9f   : > { %v554_v31 = vsel %vm538_vm3, %v530_v27, %v546_v29  ;;  %vm535_vm4 = vcmp.gt.f32.partialorder %v527_v30, 0.0  ;;  %v543_v32 = vmul.f32 0.2, %v527_v30  ;;  %v441_v33 = vpop.f32.mrf.mxu2 }
  0xa0   : > { %v562_v34 = vpack.c.bf16 %v554_v31, %v554_v31  ;;  %v514_v35 = vpop.f32.mrf.mxu3 }
  0xa1   : > { %v551_v36 = vsel %vm535_vm4, %v527_v30, %v543_v32  ;;  %v515_v37 = vadd.f32 %v514_v35, %v441_v33  ;;  %v434_v38 = vpop.f32.mrf.mxu0 }
  0xa2   : > { %571 = vst.msk [vmem:[%s953_s14 + $0x10] sm:$0xf] %vm566_vm2, %v562_v34  ;;  %v559_v39 = vpack.c.bf16 %v551_v36, %v551_v36  ;;  %v507_v40 = vpop.f32.mrf.mxu1 }
  0xa3   : > { %v531_v41 = vadd.f32 %v946_v15, %v515_v37  ;;  %v508_v42 = vadd.f32 %v507_v40, %v434_v38 }
  0xa4   : > { %568 = vst.msk [vmem:[%s953_s14 + $0x4] sm:$0xf] %vm566_vm2, %v559_v39 }
  0xa5   : > { %vm539_vm5 = vcmp.gt.f32.partialorder %v531_v41, 0.0  ;;  %v547_v43 = vmul.f32 0.2, %v531_v41  ;;  %v528_v44 = vadd.f32 %v946_v15, %v508_v42 }
  0xa7   : > { %v555_v45 = vsel %vm539_vm5, %v531_v41, %v547_v43  ;;  %vm536_vm6 = vcmp.gt.f32.partialorder %v528_v44, 0.0  ;;  %v544_v46 = vmul.f32 0.2, %v528_v44  ;;  %v444_v47 = vpop.f32.mrf.mxu2 }
  0xa8   : > { %v563_v48 = vpack.c.bf16 %v555_v45, %v555_v45  ;;  %v517_v49 = vpop.f32.mrf.mxu3 }
  0xa9   : > { %v552_v50 = vsel %vm536_vm6, %v528_v44, %v544_v46  ;;  %v518_v51 = vadd.f32 %v517_v49, %v444_v47  ;;  %v436_v52 = vpop.f32.mrf.mxu0 }
  0xaa   : > { %572 = vst.msk [vmem:[%s953_s14 + $0x14] sm:$0xf] %vm566_vm2, %v563_v48  ;;  %v560_v53 = vpack.c.bf16 %v552_v50, %v552_v50  ;;  %v509_v54 = vpop.f32.mrf.mxu1 }
  0xab   : > { %v532_v55 = vadd.f32 %v946_v15, %v518_v51  ;;  %v510_v56 = vadd.f32 %v509_v54, %v436_v52 }
  0xac   : > { %569 = vst.msk [vmem:[%s953_s14 + $0x8] sm:$0xf] %vm566_vm2, %v560_v53 }
  0xad   : > { %vm540_vm7 = vcmp.gt.f32.partialorder %v532_v55, 0.0  ;;  %v548_v57 = vmul.f32 0.2, %v532_v55  ;;  %v529_v58 = vadd.f32 %v946_v15, %v510_v56 }
  0xaf   : > { %v556_v59 = vsel %vm540_vm7, %v532_v55, %v548_v57  ;;  %vm537_vm8 = vcmp.gt.f32.partialorder %v529_v58, 0.0  ;;  %v545_v60 = vmul.f32 0.2, %v529_v58  ;;  %v446_v61 = vpop.f32.mrf.mxu2 }
  0xb0   : > { %v564_v62 = vpack.c.bf16 %v556_v59, %v556_v59  ;;  %v519_v63 = vpop.f32.mrf.mxu3 }
  0xb1   : > { %v553_v0 = vsel %vm537_vm8, %v529_v58, %v545_v60  ;;  %v520_v1 = vadd.f32 %v519_v63, %v446_v61 }
  0xb2   : > { %573 = vst.msk [vmem:[%s953_s14 + $0x18] sm:$0xf] %vm566_vm2, %v564_v62  ;;  %v561_v2 = vpack.c.bf16 %v553_v0, %v553_v0 }
  0xb3   : > { %v533_v3 = vadd.f32 %v946_v15, %v520_v1 }
  0xb4   : > { %570 = vst.msk [vmem:[%s953_s14 + $0xc] sm:$0xf] %vm566_vm2, %v561_v2 }
  0xb5   : > { %vm541_vm9 = vcmp.gt.f32.partialorder %v533_v3, 0.0  ;;  %v549_v4 = vmul.f32 0.2, %v533_v3 }
  0xb7   : > { %v557_v5 = vsel %vm541_vm9, %v533_v3, %v549_v4 }
  0xb8   : > { %v565_v6 = vpack.c.bf16 %v557_v5, %v557_v5 }
  0xba   : > { %574 = vst.msk [vmem:[%s953_s14 + $0x1c] sm:$0xf] %vm566_vm2, %v565_v6 }
  0xbb PF: > { %s14_s17 = sadd.s32 1, %s869_s17   ;;  %s992_s15 = smov %s865_s16 }
  0xbc   : > { %p11_p5 = scmp.ge.s32.totalorder %s14_s17, 4   ;;  %s993_s16 = smov %s995_s18 }
  0xbe   :  { %13 = sbr.rel (!%p11_p5) target bundleno = 2 (0x2), region = 77 }

// kernel: discriminator_forward.5
= control target key start
LH: loop header
LB: loop body
LE: loop exit
PB: predicated region body
PF: predicated region fallthrough
CT: control target
= control target key end

     0   :  { %s798_s15 = smov 0   ;;  %s800_s16 = smov 0   ;;  %s869_s0 = inlined_call_operand.vmem [shape: bf16[2,5,4,64], index: 0, kind: input, shape index: {}, may-alias: {0,1}]   ;;  %s870_s1 = inlined_call_operand.vmem [shape: bf16[2,5,4,64], index: 1, kind: input, shape index: {}, may-alias: {0,1}]   ;;  %s871_s2 = inlined_call_operand.vmem [shape: bf16[2,64,16], index: 2, kind: input, shape index: {}]   ;;  %s872_s3 = inlined_call_operand.vmem [shape: f32[1,16], index: 3, kind: input, shape index: {}]   ;;  %s873_s4 = inlined_call_operand.vmem [shape: bf16[2,4,4,16], index: 4, kind: output, shape index: {}]  }
   0x1   :  { %s802_s17 = smov 0  }
   0x2 LB: > { %s29_s18 = sadd.s32 1, %s767_s16  ;;  %p658_p0 = scmp.ge.s32.totalorder %s771_s17, 1  ;;  %s771_s17 = sphi %s802_s17, %s14_s17   ;;  %s767_s16 = sphi %s800_s16, %s875_s16   ;;  %s763_s15 = sphi %s798_s15, %s874_s15  }
   0x3   : > { %p31_p1 = scmp.ge.s32.totalorder %s29_s18, 2  ;;  %p240_p2 = scmp.lt.s32.totalorder %s771_s17, 3 }
   0x5   : > { %s877_s18 = smov (%p31_p1, %s29_s18), 0  ;;  %p241_p3 = pnand %p658_p0, %p240_p2 }
   0x6   : > { %p303_p4 = scmp.lt.s32.totalorder (!%p241_p3), %s763_s15, 1 }
   0x7   : > { %244 = sbr.rel (%p241_p3) target bundleno = 185 (0xb9), region = 36 }
   0xc   : > { %v720_v0 = vld [vmem:[%s871_s2 + $0x38] sm:$0xff]  ;;  %v719_v2 = vld [vmem:[%s871_s2 + $0x30] sm:$0xff]  ;;  %s879_s15 = smov (!%p303_p4, %s763_s15), 1  ;;  %v718_v4 = vld [vmem:[%s871_s2 + $0x28] sm:$0xff]  ;;  %vm411_vm0 = vcmask 523264   ;;  %vm502_vm2 = vcmask 123904  }
   0xd   : > { %v716_v1 = vld [vmem:[%s871_s2 + $0x18] sm:$0xff]  ;;  %418 = vmatpush.bf16.msra.mxu0 %v720_v0  ;;  %v715_v3 = vld [vmem:[%s871_s2 + $0x10] sm:$0xff]  ;;  %s721_s27 = smul.u32 10, %s879_s15  ;;  %v714_v5 = vld [vmem:[%s871_s2 + $0x8] sm:$0xff]  ;;  %s712_s23 = sshll.u32 %s879_s15, 3 }
   0xe   : > { %470 = vmatpush.bf16.msra.mxu1 %v716_v1  ;;  %v717_v10 = vld [vmem:[%s871_s2 + $0x20] sm:$0xff]  ;;  %s346_s26 = scalar_lea.vmem %s873_s4, %s712_s23 }
   0xf   : > { %s310_s6 = scalar_lea.vmem %s869_s0, %s721_s27  ;;  %s711_s7 = sadd.s32 8, %s721_s27  ;;  %v713_v11 = vld [vmem:[%s871_s2] sm:$0xff] }
  0x10   : > { %s325_s12 = scalar_lea.vmem %s870_s1, %s711_s7  ;;  %v663_v6 = vld [vmem:[%s310_s6 + $0x2] sm:$0x3]  ;;  %v664_v7 = vld [vmem:[%s310_s6 + $0x4] sm:$0x3]  ;;  %v665_v8 = vld [vmem:[%s310_s6 + $0x6] sm:$0x3] }
  0x11   : > { %419 = vmatpush.bf16.msra.mxu0 %v719_v2  ;;  %v365_v9 = vld [vmem:[%s325_s12] sm:$0x3]  ;;  %376 = vst [vmem:[#allocation1] ss:$4 sm:$0xff] %v663_v6  ;;  %v350_v13 = vld [vmem:[%s310_s6 + $0x2] sm:$0x3] }
  0x12   : > { %471 = vmatpush.bf16.msra.mxu1 %v715_v3  ;;  %379 = vst [vmem:[#allocation1 + $0x1] ss:$4 sm:$0xff] %v664_v7  ;;  %v349_v12 = vld [vmem:[%s310_s6] sm:$0x3]  ;;  %v351_v14 = vld [vmem:[%s310_s6 + $0x4] sm:$0x3] }
  0x13   : > { %382 = vst [vmem:[#allocation1 + $0x2] ss:$4 sm:$0xff] %v665_v8  ;;  %v352_v16 = vld [vmem:[%s310_s6 + $0x6] sm:$0x3]  ;;  %v748_v19 = vld [vmem:[%s872_s3] ss:$0 sm:$0xff] }
  0x14   : > { %385 = vst [vmem:[#allocation1 + $0x3] ss:$4 sm:$0xff] %v365_v9 }
  0x15   : > { %420 = vmatpush.bf16.msra.mxu0 %v718_v4 }
  0x16   : > { %472 = vmatpush.bf16.msra.mxu1 %v714_v5 }
  0x19   : > { %421 = vmatpush.bf16.msra.mxu0 %v717_v10 }
  0x1a   : > { %473 = vmatpush.bf16.msra.mxu1 %v713_v11 }
  0x1b   : > { %v386_v15 = vld.sshfl [vmem:[#allocation1] sm:$0xff pattern:$0x73625140] }
  0x1c   : > { %690 = vmatmul.msk.bf16.vlgmr.msra.gmra.mxu0 %vm411_vm0, %v386_v15  ;;  %429 = vst [vmem:[#allocation1] ss:$4 sm:$0xff] %v349_v12 }
  0x1d   : > { %432 = vst [vmem:[#allocation1 + $0x1] ss:$4 sm:$0xff] %v350_v13 }
  0x1e   : > { %435 = vst [vmem:[#allocation1 + $0x2] ss:$4 sm:$0xff] %v351_v14 }
  0x1f   : > { %438 = vst [vmem:[#allocation1 + $0x3] ss:$4 sm:$0xff] %v352_v16 }
  0x26   : > { %v439_v17 = vld.sshfl [vmem:[#allocation1] sm:$0xff pattern:$0x73625140] }
  0x27   : > { %707 = vmatmul.msk.bf16.vlgmr.msra.gmra.mxu1 %vm411_vm0, %v439_v17 }
  0x99   : > { %v423_v18 = vpop.f32.mrf.mxu0 }
  0xa1   : > { %v425_v27 = vpop.f32.mrf.mxu0 }
  0xa4   : > { %v475_v20 = vpop.f32.mrf.mxu1 }
  0xa5   : > { %v476_v21 = vadd.f32 %v475_v20, %v423_v18 }
  0xa7   : > { %v484_v22 = vadd.f32 %v748_v19, %v476_v21 }
  0xa9   : > { %vm486_vm1 = vcmp.gt.f32.partialorder %v484_v22, 0.0  ;;  %v488_v23 = vmul.f32 0.2, %v484_v22 }
  0xab   : > { %v490_v24 = vsel %vm486_vm1, %v484_v22, %v488_v23 }
  0xac   : > { %v494_v25 = vrot.slane %v490_v24, 4  ;;  %v498_v26 = vpack.c.bf16 %v490_v24, %v490_v24  ;;  %v477_v28 = vpop.f32.mrf.mxu1 }
  0xad   : > { %v478_v29 = vadd.f32 %v477_v28, %v425_v27 }
  0xae   : > { %v499_v30 = vpack.c.bf16 %v494_v25, %v494_v25  ;;  %503 = vst.msk [vmem:[%s346_s26] sm:$0x3] %vm502_vm2, %v498_v26 }
  0xaf   : > { %v485_v31 = vadd.f32 %v748_v19, %v478_v29 }
  0xb0   : > { %504 = vst.msk [vmem:[%s346_s26 + $0x2] sm:$0x3] %vm502_vm2, %v499_v30 }
  0xb1   : > { %vm487_vm3 = vcmp.gt.f32.partialorder %v485_v31, 0.0  ;;  %v489_v32 = vmul.f32 0.2, %v485_v31 }
  0xb3   : > { %v491_v33 = vsel %vm487_vm3, %v485_v31, %v489_v32 }
  0xb4   : > { %v495_v34 = vrot.slane %v491_v33, 4  ;;  %v500_v35 = vpack.c.bf16 %v491_v33, %v491_v33 }
  0xb6   : > { %v501_v36 = vpack.c.bf16 %v495_v34, %v495_v34  ;;  %505 = vst.msk [vmem:[%s346_s26 + $0x4] sm:$0x3] %vm502_vm2, %v500_v35 }
  0xb8   : > { %506 = vst.msk [vmem:[%s346_s26 + $0x6] sm:$0x3] %vm502_vm2, %v501_v36 }
  0xb9 PF: > { %s14_s17 = sadd.s32 1, %s771_s17   ;;  %s874_s15 = smov %s767_s16 }
  0xba   : > { %p11_p5 = scmp.ge.s32.totalorder %s14_s17, 4   ;;  %s875_s16 = smov %s877_s18 }
  0xbc   :  { %13 = sbr.rel (!%p11_p5) target bundleno = 2 (0x2), region = 83 }

// kernel: discriminator_forward.7
= control target key start
LH: loop header
LB: loop body
LE: loop exit
PB: predicated region body
PF: predicated region fallthrough
CT: control target
= control target key end

     0   :  { %vm44_vm0 = vcmask 261120   ;;  %vm104_vm2 = vcmask 1024   ;;  %s219_s1 = inlined_call_operand.vmem [shape: bf16[32,128], index: 1, kind: input, shape index: {}]   ;;  %s220_s3 = inlined_call_operand.vmem [shape: f32[128,1], index: 3, kind: input, shape index: {}]   ;;  %s221_s0 = inlined_call_operand.vmem [shape: bf16[2,32], index: 0, kind: input, shape index: {}]   ;;  %s222_s2 = inlined_call_operand.vmem [shape: f32[1,128], index: 2, kind: input, shape index: {}]   ;;  %s223_s4 = inlined_call_operand.<no memory space> [shape: f32[1,1], index: 4, kind: input, shape index: {}]   ;;  %s224_s5 = inlined_call_operand.vmem [shape: f32[2,1], index: 5, kind: output, shape index: {}]  }
   0x1   :  { %v120_v0 = vld [vmem:[%s219_s1 + $0x8] sm:$0xff]  ;;  %v79_v1 = vld [vmem:[%s220_s3 + $0x78] sm:$0xff]  ;;  %v78_v2 = vld [vmem:[%s220_s3 + $0x70] sm:$0xff]  ;;  %v10_v19 = vstv %s223_s4 }
   0x2   :  { %54 = vmatpush.bf16.msra.mxu0 %v120_v0  ;;  %v119_v3 = vld [vmem:[%s219_s1] sm:$0xff]  ;;  %84 = vmatpush.msra.mxu1 %v79_v1  ;;  %v77_v4 = vld [vmem:[%s220_s3 + $0x68] sm:$0xff]  ;;  %v75_v7 = vld [vmem:[%s220_s3 + $0x58] sm:$0xff]  ;;  %11 = vst [vmem:[#allocation2] sm:$0x1] %v10_v19 }
   0x3   :  { %v76_v5 = vld [vmem:[%s220_s3 + $0x60] sm:$0xff]  ;;  %v74_v8 = vld [vmem:[%s220_s3 + $0x50] sm:$0xff]  ;;  %v73_v9 = vld [vmem:[%s220_s3 + $0x48] sm:$0xff] }
   0x4   :  { %85 = vmatpush.msra.mxu1 %v78_v2  ;;  %v23_v6 = vld [vmem:[%s221_s0] sm:$0x1]  ;;  %v71_v11 = vld [vmem:[%s220_s3 + $0x38] sm:$0xff]  ;;  %v70_v12 = vld [vmem:[%s220_s3 + $0x30] sm:$0xff] }
   0x5   :  { %v72_v10 = vld [vmem:[%s220_s3 + $0x40] sm:$0xff]  ;;  %v69_v13 = vld [vmem:[%s220_s3 + $0x28] sm:$0xff]  ;;  %v67_v15 = vld [vmem:[%s220_s3 + $0x18] sm:$0xff] }
   0x6   :  { %55 = vmatpush.bf16.msra.mxu0 %v119_v3  ;;  %86 = vmatpush.msra.mxu1 %v77_v4  ;;  %v68_v14 = vld [vmem:[%s220_s3 + $0x20] sm:$0xff]  ;;  %v66_v16 = vld [vmem:[%s220_s3 + $0x10] sm:$0xff]  ;;  %v65_v17 = vld [vmem:[%s220_s3 + $0x8] sm:$0xff] }
   0x7   :  { %v64_v18 = vld [vmem:[%s220_s3] sm:$0xff] }
   0x8   :  { %87 = vmatpush.msra.mxu1 %v76_v5  ;;  %v121_v20 = vld [vmem:[%s222_s2] ss:$0 sm:$0xff] }
   0x9   :  { %118 = vmatmul.msk.bf16.vlgmr.msra.gmra.mxu0 %vm44_vm0, %v23_v6  ;;  %v122_v26 = vld [vmem:[#allocation2] ss:$0 sm:$0xff] }
   0xa   :  { %88 = vmatpush.msra.mxu1 %v75_v7 }
   0xc   :  { %89 = vmatpush.msra.mxu1 %v74_v8 }
   0xe   :  { %90 = vmatpush.msra.mxu1 %v73_v9 }
  0x10   :  { %91 = vmatpush.msra.mxu1 %v72_v10 }
  0x12   :  { %92 = vmatpush.msra.mxu1 %v71_v11 }
  0x14   :  { %93 = vmatpush.msra.mxu1 %v70_v12 }
  0x16   :  { %94 = vmatpush.msra.mxu1 %v69_v13 }
  0x18   :  { %95 = vmatpush.msra.mxu1 %v68_v14 }
  0x1a   :  { %96 = vmatpush.msra.mxu1 %v67_v15 }
  0x1c   :  { %97 = vmatpush.msra.mxu1 %v66_v16 }
  0x1e   :  { %98 = vmatpush.msra.mxu1 %v65_v17 }
  0x20   :  { %99 = vmatpush.msra.mxu1 %v64_v18 }
  0x86   :  { %v57_v21 = vpop.f32.mrf.mxu0 }
  0x87   :  { %v58_v22 = vadd.f32 %v121_v20, %v57_v21 }
  0x89   :  { %vm61_vm1 = vcmp.gt.f32.partialorder %v58_v22, 0.0  ;;  %v62_v23 = vmul.f32 0.2, %v58_v22 }
  0x8b   :  { %v63_v24 = vsel %vm61_vm1, %v58_v22, %v62_v23 }
  0x8c   :  { %100 = vmatmul.f32.vlgmr.msra.gmra.mxu1 %v63_v24 }
  0x8e   :  { %v59_v25 = vpop.f32.mrf.mxu0 }
 0x109   :  { %v101_v27 = vpop.f32.mrf.mxu1 }
 0x10a   :  { %v102_v28 = vadd.f32 %v122_v26, %v101_v27 }
 0x10c   :  { %105 = vst.msk [vmem:[%s224_s5] sm:$0x3] %vm104_vm2, %v102_v28 }

// kernel: discriminator_forward.6
= control target key start
LH: loop header
LB: loop body
LE: loop exit
PB: predicated region body
PF: predicated region fallthrough
CT: control target
= control target key end

     0   :  { %vm104_vm0 = vcmask 254976   ;;  %v450_v30 = vmov 0.0   ;;  %vm308_vm2 = vcmask 257024   ;;  %vm325_vm3 = vcmask 1041409   ;;  %s557_s0 = inlined_call_operand.vmem [shape: bf16[2,3,2,128], index: 0, kind: input, shape index: {}, may-alias: {0,1}]   ;;  %s558_s1 = inlined_call_operand.vmem [shape: bf16[2,3,2,128], index: 1, kind: input, shape index: {}, may-alias: {0,1}]   ;;  %s559_s2 = inlined_call_operand.vmem [shape: bf16[2,128,32], index: 2, kind: input, shape index: {}]   ;;  %s560_s3 = inlined_call_operand.vmem [shape: f32[1,32], index: 3, kind: input, shape index: {}]   ;;  %s561_s4 = inlined_call_operand.vmem [shape: f32[2,32], index: 4, kind: output, shape index: {}]  }
   0x1   :  { %v447_v0 = vld [vmem:[%s559_s2 + $0x78] sm:$0xff]  ;;  %v446_v2 = vld [vmem:[%s559_s2 + $0x70] sm:$0xff]  ;;  %v445_v4 = vld [vmem:[%s559_s2 + $0x68] sm:$0xff]  ;;  %105 = vst.msk [vmem:[%s561_s4] sm:$0x3] %vm104_vm0, %v450_v30 }
   0x2   :  { %v439_v1 = vld [vmem:[%s559_s2 + $0x38] sm:$0xff]  ;;  %209 = vmatpush.bf16.msra.mxu0 %v447_v0  ;;  %v438_v3 = vld [vmem:[%s559_s2 + $0x30] sm:$0xff]  ;;  %v437_v5 = vld [vmem:[%s559_s2 + $0x28] sm:$0xff] }
   0x3   :  { %283 = vmatpush.bf16.msra.mxu1 %v439_v1  ;;  %v27_v6 = vld [vmem:[%s557_s0] sm:$0x3]  ;;  %v29_v7 = vld [vmem:[%s557_s0 + $0x3] sm:$0x3]  ;;  %v350_v8 = vld [vmem:[%s558_s1 + $0x2] sm:$0x1] }
   0x4   :  { %28 = vst [vmem:[#allocation2] sm:$0x3] %v27_v6  ;;  %v351_v9 = vld [vmem:[%s558_s1 + $0x5] sm:$0x1]  ;;  %v443_v13 = vld [vmem:[%s559_s2 + $0x58] sm:$0xff]  ;;  %v442_v18 = vld [vmem:[%s559_s2 + $0x50] sm:$0xff] }
   0x5   :  { %30 = vst [vmem:[#allocation2 + $0x2] sm:$0x3] %v29_v7  ;;  %v444_v10 = vld [vmem:[%s559_s2 + $0x60] sm:$0xff]  ;;  %v435_v14 = vld [vmem:[%s559_s2 + $0x18] sm:$0xff]  ;;  %v434_v19 = vld [vmem:[%s559_s2 + $0x10] sm:$0xff] }
   0x6   :  { %210 = vmatpush.bf16.msra.mxu0 %v446_v2  ;;  %70 = vst [vmem:[#allocation3] sm:$0x1] %v350_v8  ;;  %v436_v11 = vld [vmem:[%s559_s2 + $0x20] sm:$0xff]  ;;  %v441_v20 = vld [vmem:[%s559_s2 + $0x48] sm:$0xff] }
   0x7   :  { %284 = vmatpush.bf16.msra.mxu1 %v438_v3  ;;  %72 = vst [vmem:[#allocation3 + $0x1] sm:$0x1] %v351_v9  ;;  %v433_v21 = vld [vmem:[%s559_s2 + $0x8] sm:$0xff]  ;;  %v440_v26 = vld [vmem:[%s559_s2 + $0x40] sm:$0xff] }
   0x8   :  { %v432_v27 = vld [vmem:[%s559_s2] sm:$0xff] }
   0x9   :  { %v449_v32 = vld [vmem:[%s560_s3] ss:$0 sm:$0xff] }
   0xa   :  { %211 = vmatpush.bf16.msra.mxu0 %v445_v4  ;;  %v304_v53 = vld [vmem:[%s561_s4] sm:$0x3] }
   0xb   :  { %285 = vmatpush.bf16.msra.mxu1 %v437_v5  ;;  %v127_v12 = vld [vmem:[#allocation2 + $0x1] sm:$0x1]  ;;  %v106_v22 = vld [vmem:[#allocation2] sm:$0x1] }
   0xc   :  { %v128_v15 = vld [vmem:[#allocation2 + $0x3] sm:$0x1]  ;;  %149 = vst [vmem:[#allocation1] ss:$9 sm:$0xff] %v127_v12  ;;  %v107_v23 = vld [vmem:[#allocation2 + $0x1] sm:$0x1] }
   0xd   :  { %v129_v16 = vld [vmem:[#allocation3] sm:$0x1]  ;;  %155 = vst [vmem:[#allocation1 + $0x2] ss:$9 sm:$0xff] %v128_v15  ;;  %v108_v24 = vld [vmem:[#allocation2 + $0x2] sm:$0x1] }
   0xe   :  { %212 = vmatpush.bf16.msra.mxu0 %v444_v10  ;;  %v130_v17 = vld [vmem:[#allocation3 + $0x1] sm:$0x1]  ;;  %152 = vst [vmem:[#allocation1 + $0x1] ss:$9 sm:$0xff] %v129_v16  ;;  %v109_v28 = vld [vmem:[#allocation2 + $0x3] sm:$0x1] }
   0xf   :  { %286 = vmatpush.bf16.msra.mxu1 %v436_v11  ;;  %158 = vst [vmem:[#allocation1 + $0x3] ss:$9 sm:$0xff] %v130_v17 }
  0x12   :  { %213 = vmatpush.bf16.msra.mxu0 %v443_v13 }
  0x13   :  { %287 = vmatpush.bf16.msra.mxu1 %v435_v14 }
  0x16   :  { %214 = vmatpush.bf16.msra.mxu0 %v442_v18  ;;  %v159_v25 = vld [vmem:[#allocation1] sm:$0xff] }
  0x17   :  { %288 = vmatpush.bf16.msra.mxu1 %v434_v19  ;;  %223 = vst [vmem:[#allocation1] ss:$9 sm:$0xff] %v106_v22 }
  0x18   :  { %226 = vst [vmem:[#allocation1 + $0x1] ss:$9 sm:$0xff] %v107_v23 }
  0x19   :  { %229 = vst [vmem:[#allocation1 + $0x2] ss:$9 sm:$0xff] %v108_v24 }
  0x1a   :  { %215 = vmatpush.bf16.msra.mxu0 %v441_v20  ;;  %232 = vst [vmem:[#allocation1 + $0x3] ss:$9 sm:$0xff] %v109_v28 }
  0x1b   :  { %289 = vmatpush.bf16.msra.mxu1 %v433_v21 }
  0x1e   :  { %216 = vmatpush.bf16.msra.mxu0 %v440_v26 }
  0x1f   :  { %290 = vmatpush.bf16.msra.mxu1 %v432_v27 }
  0x21   :  { %217 = vmatmul.bf16.vlgmr.msra.gmra.mxu0 %v159_v25  ;;  %v233_v29 = vld [vmem:[#allocation1] sm:$0xff] }
  0x22   :  { %291 = vmatmul.bf16.vlgmr.msra.gmra.mxu1 %v233_v29 }
  0x9e   :  { %v218_v31 = vpop.f32.mrf.mxu0 }
  0x9f   :  { %v292_v33 = vpop.f32.mrf.mxu1 }
  0xa0   :  { %v293_v34 = vadd.f32 %v292_v33, %v218_v31 }
  0xa2   :  { %v300_v35 = vadd.f32 %v449_v32, %v293_v34 }
  0xa4   :  { %vm301_vm1 = vcmp.gt.f32.partialorder %v300_v35, 0.0  ;;  %v302_v37 = vmul.f32 0.2, %v300_v35 }
  0xa6   :  { %v220_v36 = vpop.f32.mrf.mxu0  ;;  %v303_v38 = vsel %vm301_vm1, %v300_v35, %v302_v37 }
  0xa7   :  { %v306_v39 = vrot.slane %v303_v38, 4  ;;  %v309_v40 = vsel %vm308_vm2, %v303_v38, 0.0  ;;  %v294_v41 = vpop.f32.mrf.mxu1 }
  0xa8   :  { %v310_v42 = vrot.slane %v309_v40, 4 }
  0xa9   :  { %v316_v43 = vsel %vm308_vm2, %v306_v39, 0.0 }
  0xaa   :  { %v311_v44 = vadd.f32 %v310_v42, %v309_v40  ;;  %v317_v45 = vrot.slane %v316_v43, 4 }
  0xac   :  { %v312_v46 = vrot.slane %v311_v44, 2  ;;  %v318_v47 = vadd.f32 %v317_v45, %v316_v43 }
  0xae   :  { %v313_v48 = vadd.f32 %v312_v46, %v311_v44  ;;  %v319_v49 = vrot.slane %v318_v47, 2 }
  0xb0   :  { %v314_v50 = vrot.slane %v313_v48, 1  ;;  %v320_v51 = vadd.f32 %v319_v49, %v318_v47 }
  0xb2   :  { %v321_v52 = vrot.slane %v320_v51, 1  ;;  %v315_v54 = vadd.f32 %v314_v50, %v313_v48 }
  0xb4   :  { %v322_v55 = vadd.f32 %v321_v52, %v320_v51 }
  0xb6   :  { %v326_v56 = vsel %vm325_vm3, %v322_v55, %v315_v54 }
  0xb7   :  { %v328_v57 = vadd.f32 %v326_v56, %v304_v53 }
  0xb9   :  { %330 = vst.msk [vmem:[%s561_s4] sm:$0x3] %vm104_vm0, %v328_v57 }
  0xc0   :  { %v334_v58 = vld [vmem:[%s561_s4] sm:$0x3] }
  0xc1   :  { %v335_v59 = vmul.f32 0.25, %v334_v58 }
  0xc3   :  { %336 = vst.msk [vmem:[%s561_s4] sm:$0x3] %vm104_vm0, %v335_v59 }

</bundles_post_ra>
